<compile_context>
chip_gen: v7x
topology: tpu7x:2x2x1
jax: 0.10.0
libtpu: 0.0.40
codegen_flags: <defaults>
</compile_context>

<pallas_src>
import math
import functools

import jax
import jax.numpy as jnp
from jax import lax
from jax.experimental import pallas as pl
from jax.experimental.pallas import tpu as pltpu


def _round_up(x, m):
    return ((x + m - 1) // m) * m


def _transform_kernel(x_ref, wt_ref, b_ref, g_ref, beta_ref, o_ref, *, eps):
    """y = LayerNorm(gelu(x @ W_t + b)) for one (tm, H) row tile."""
    # MXU matmul in the operands' native dtype (bf16 -> native MXU path,
    # f32 -> exact), accumulate in f32.
    h = jnp.dot(x_ref[...], wt_ref[...], preferred_element_type=jnp.float32)
    h = h + b_ref[...].astype(jnp.float32)

    # Exact GELU: x * 0.5 * (1 + erf(x / sqrt(2)))  -- matches the PyTorch spec.
    # TODO(synk): tanh-approx GELU would route through the EUP slot but changes
    # numerics (~1e-3), so the exact erf form is kept.
    h = h * 0.5 * (1.0 + lax.erf(h * (1.0 / math.sqrt(2.0))))

    # LayerNorm over the last dim (biased variance, like nn.LayerNorm).
    mean = jnp.mean(h, axis=-1, keepdims=True)
    centered = h - mean
    var = jnp.mean(centered * centered, axis=-1, keepdims=True)
    # Fold gamma into the rsqrt scale; rsqrt stays on the EUP path.
    scale = lax.rsqrt(var + eps) * g_ref[...].astype(jnp.float32)
    y = centered * scale + beta_ref[...].astype(jnp.float32)

    o_ref[...] = y.astype(o_ref.dtype)


def _pick_tm(M, H, x_itemsize, w_itemsize, tm_max, vmem_budget):
    """Largest row tile (multiple of 8, <= tm_max) whose working set fits the budget."""
    tm = min(_round_up(max(M, 1), 8), tm_max)

    def footprint(t):
        w = H * H * w_itemsize                 # weight, single-buffered
        io = 2 * (2 * t * H * x_itemsize)      # x + out tiles, double-buffered
        scratch = 4 * t * H * 4                # headroom for f32 intermediates
        params = 3 * 2 * H * 4                 # bias / gamma / beta
        return w + io + scratch + params

    while tm > 8 and footprint(tm) > vmem_budget:
        tm = max(8, _round_up(tm // 2, 8))
    return tm


def bert_prediction_head_transform(x, weight, bias, gamma, beta, *, eps=1e-12,
                                   tm_max=256, vmem_budget=20 * 1024 * 1024):
    """x: (..., H). weight: (H, H) as in nn.Linear (out, in). Returns same shape as x."""
    orig_shape = x.shape
    H = orig_shape[-1]
    x2 = x.reshape(-1, H)
    M = x2.shape[0]

    # TODO(synk): for H >> 2048 add a second grid axis over output columns so the
    # whole HxH weight need not be VMEM-resident; unnecessary for BERT sizes.
    tm = _pick_tm(M, H, x2.dtype.itemsize, weight.dtype.itemsize, tm_max, vmem_budget)

    # Pad rows so the grid tiles evenly (padding rows are sliced off afterwards).
    M_pad = _round_up(M, tm)
    if M_pad != M:
        x2 = jnp.pad(x2, ((0, M_pad - M), (0, 0)))

    wt = weight.T                      # (in, out) so the kernel does x @ wt
    b2 = bias.reshape(1, H)
    g2 = gamma.reshape(1, H)
    be2 = beta.reshape(1, H)

    kernel = functools.partial(_transform_kernel, eps=eps)

    param_bytes = (b2.size + g2.size + be2.size) * 4
    cost = pl.CostEstimate(
        flops=2 * M_pad * H * H,
        transcendentals=M_pad * H,
        bytes_accessed=(x2.size * x2.dtype.itemsize
                        + wt.size * wt.dtype.itemsize
                        + M_pad * H * x.dtype.itemsize
                        + param_bytes),
    )

    out = pl.pallas_call(
        kernel,
        out_shape=jax.ShapeDtypeStruct((M_pad, H), x.dtype),
        grid_spec=pltpu.PrefetchScalarGridSpec(
            num_scalar_prefetch=0,
            grid=(M_pad // tm,),
            in_specs=[
                pl.BlockSpec((tm, H), lambda i: (i, 0)),          # x row tile
                pl.BlockSpec((H, H), lambda i: (0, 0),
                             pipeline_mode=pl.Buffered(1)),       # resident W^T
                pl.BlockSpec((1, H), lambda i: (0, 0)),           # bias
                pl.BlockSpec((1, H), lambda i: (0, 0)),           # LN gamma
                pl.BlockSpec((1, H), lambda i: (0, 0)),           # LN beta
            ],
            out_specs=pl.BlockSpec((tm, H), lambda i: (i, 0)),
        ),
        compiler_params=pltpu.CompilerParams(
            dimension_semantics=("parallel",),
            vmem_limit_bytes=32 * 1024 * 1024,
        ),
        cost_estimate=cost,
    )(x2, wt, b2, g2, be2)

    if M_pad != M:
        out = out[:M]
    return out.reshape(orig_shape)


def _reference(x, weight, bias, gamma, beta, eps=1e-12):
    h = jnp.einsum("...i,oi->...o", x, weight) + bias
    h = h * 0.5 * (1.0 + lax.erf(h / jnp.sqrt(2.0)))
    mean = jnp.mean(h, axis=-1, keepdims=True)
    var = jnp.mean((h - mean) ** 2, axis=-1, keepdims=True)
    return (h - mean) / jnp.sqrt(var + eps) * gamma + beta


if __name__ == "__main__":
    batch, seq, emb_dim = 2, 8, 32
    eps = 1e-12

    key = jax.random.PRNGKey(0)
    k_x, k_w, k_b = jax.random.split(key, 3)

    # hidden_states: (batch, seq, emb_dim)
    x = jax.random.normal(k_x, (batch, seq, emb_dim), dtype=jnp.float32)

    # Deterministic parameter init (nn.Linear-like uniform, LayerNorm affine = ones/zeros)
    bound = 1.0 / math.sqrt(emb_dim)
    weight = jax.random.uniform(k_w, (emb_dim, emb_dim), jnp.float32, -bound, bound)
    bias = jax.random.uniform(k_b, (emb_dim,), jnp.float32, -bound, bound)
    gamma = jnp.ones((emb_dim,), jnp.float32)
    beta = jnp.zeros((emb_dim,), jnp.float32)

    out = bert_prediction_head_transform(x, weight, bias, gamma, beta, eps=eps)
    out = jax.block_until_ready(out)

    ref = _reference(x, weight, bias, gamma, beta, eps=eps)
    assert out.shape == x.shape
    assert jnp.allclose(out, ref, atol=1e-5, rtol=1e-5), "mismatch vs reference"

    print("KERNEL_OK")
</pallas_src>

<mosaic_0001>
module attributes {stable_mosaic.version = 11 : i64} {
  func.func @_transform_kernel(%arg0: i32, %arg1: memref<16x32xf32, #tpu.memory_space<vmem>>, %arg2: memref<32x32xf32, #tpu.memory_space<vmem>>, %arg3: memref<1x32xf32, #tpu.memory_space<vmem>>, %arg4: memref<1x32xf32, #tpu.memory_space<vmem>>, %arg5: memref<1x32xf32, #tpu.memory_space<vmem>>, %arg6: memref<16x32xf32, #tpu.memory_space<vmem>>) attributes {dimension_semantics = [#tpu.dimension_semantics<parallel>], iteration_bounds = array<i64: 1>, scalar_prefetch = 0 : i64, scratch_operands = 0 : i64, tpu.core_type = #tpu.core_type<tc>, window_params = [{transform_indices = @transform_0, window_bounds = array<i64: 16, 32>}, {pipeline_mode = #tpu.pipeline_mode<synchronous>, transform_indices = @transform_1, window_bounds = array<i64: 32, 32>}, {pipeline_mode = #tpu.pipeline_mode<synchronous>, transform_indices = @transform_2, window_bounds = array<i64: 1, 32>}, {pipeline_mode = #tpu.pipeline_mode<synchronous>, transform_indices = @transform_3, window_bounds = array<i64: 1, 32>}, {pipeline_mode = #tpu.pipeline_mode<synchronous>, transform_indices = @transform_4, window_bounds = array<i64: 1, 32>}, {transform_indices = @transform_5, window_bounds = array<i64: 16, 32>}]} {
    %c0 = arith.constant 0 : index
    %c0_0 = arith.constant 0 : index
    %0 = vector.load %arg1[%c0, %c0_0] : memref<16x32xf32, #tpu.memory_space<vmem>>, vector<16x32xf32>
    %c0_1 = arith.constant 0 : index
    %c0_2 = arith.constant 0 : index
    %1 = vector.load %arg2[%c0_1, %c0_2] : memref<32x32xf32, #tpu.memory_space<vmem>>, vector<32x32xf32>
    %cst = arith.constant dense<0.000000e+00> : vector<16x32xf32>
    %2 = tpu.matmul %0, %1, %cst {dimension_numbers = #tpu.dot_dimension_numbers<[1], [0], [0], [1], [0, 0, 1, 1], [], []>} : vector<16x32xf32>, vector<32x32xf32>, vector<16x32xf32> -> vector<16x32xf32>
    %c0_3 = arith.constant 0 : index
    %c0_4 = arith.constant 0 : index
    %3 = vector.load %arg3[%c0_3, %c0_4] : memref<1x32xf32, #tpu.memory_space<vmem>>, vector<1x32xf32>
    %4 = vector.broadcast %3 : vector<1x32xf32> to vector<16x32xf32>
    %5 = arith.addf %2, %4 : vector<16x32xf32>
    %cst_5 = arith.constant 5.000000e-01 : f32
    %6 = vector.broadcast %cst_5 : f32 to vector<16x32xf32>
    %7 = arith.mulf %5, %6 : vector<16x32xf32>
    %cst_6 = arith.constant 0.707106769 : f32
    %8 = vector.broadcast %cst_6 : f32 to vector<16x32xf32>
    %9 = arith.mulf %5, %8 : vector<16x32xf32>
    %10 = math.erf %9 : vector<16x32xf32>
    %cst_7 = arith.constant 1.000000e+00 : f32
    %11 = vector.broadcast %cst_7 : f32 to vector<16x32xf32>
    %12 = arith.addf %11, %10 : vector<16x32xf32>
    %13 = arith.mulf %7, %12 : vector<16x32xf32>
    %cst_8 = arith.constant dense<0.000000e+00> : vector<16xf32>
    %14 = vector.multi_reduction <add>, %13, %cst_8 [1] : vector<16x32xf32> to vector<16xf32>
    %15 = vector.shape_cast %14 : vector<16xf32> to vector<16x1xf32>
    %cst_9 = arith.constant 3.200000e+01 : f32
    %16 = vector.broadcast %cst_9 : f32 to vector<16x1xf32>
    %17 = arith.divf %15, %16 : vector<16x1xf32>
    %18 = vector.broadcast %17 : vector<16x1xf32> to vector<16x32xf32>
    %19 = arith.subf %13, %18 : vector<16x32xf32>
    %20 = arith.mulf %19, %19 : vector<16x32xf32>
    %cst_10 = arith.constant dense<0.000000e+00> : vector<16xf32>
    %21 = vector.multi_reduction <add>, %20, %cst_10 [1] : vector<16x32xf32> to vector<16xf32>
    %22 = vector.shape_cast %21 : vector<16xf32> to vector<16x1xf32>
    %cst_11 = arith.constant 3.200000e+01 : f32
    %23 = vector.broadcast %cst_11 : f32 to vector<16x1xf32>
    %24 = arith.divf %22, %23 : vector<16x1xf32>
    %cst_12 = arith.constant 9.99999996E-13 : f32
    %25 = vector.broadcast %cst_12 : f32 to vector<16x1xf32>
    %26 = arith.addf %24, %25 : vector<16x1xf32>
    %27 = math.rsqrt %26 : vector<16x1xf32>
    %c0_13 = arith.constant 0 : index
    %c0_14 = arith.constant 0 : index
    %28 = vector.load %arg4[%c0_13, %c0_14] : memref<1x32xf32, #tpu.memory_space<vmem>>, vector<1x32xf32>
    %29 = vector.broadcast %27 : vector<16x1xf32> to vector<16x32xf32>
    %30 = vector.broadcast %28 : vector<1x32xf32> to vector<16x32xf32>
    %31 = arith.mulf %29, %30 : vector<16x32xf32>
    %32 = arith.mulf %19, %31 : vector<16x32xf32>
    %c0_15 = arith.constant 0 : index
    %c0_16 = arith.constant 0 : index
    %33 = vector.load %arg5[%c0_15, %c0_16] : memref<1x32xf32, #tpu.memory_space<vmem>>, vector<1x32xf32>
    %34 = vector.broadcast %33 : vector<1x32xf32> to vector<16x32xf32>
    %35 = arith.addf %32, %34 : vector<16x32xf32>
    %c0_17 = arith.constant 0 : index
    %c0_18 = arith.constant 0 : index
    %36 = vector.load %arg6[%c0_17, %c0_18] : memref<16x32xf32, #tpu.memory_space<vmem>>, vector<16x32xf32>
    tpu.vector_store %arg6[%c0_17, %c0_18], %35 {strides = array<i32>} : memref<16x32xf32, #tpu.memory_space<vmem>>, vector<16x32xf32>,
    return
  }
  func.func @transform_0(%arg0: i32) -> (i32, i32) {
    %c0_i32 = arith.constant 0 : i32
    %c0_i32_0 = arith.constant 0 : i32
    return %arg0, %c0_i32 : i32, i32
  }
  func.func @transform_1(%arg0: i32) -> (i32, i32) {
    %c0_i32 = arith.constant 0 : i32
    %c0_i32_0 = arith.constant 0 : i32
    %c0_i32_1 = arith.constant 0 : i32
    return %c0_i32, %c0_i32_0 : i32, i32
  }
  func.func @transform_2(%arg0: i32) -> (i32, i32) {
    %c0_i32 = arith.constant 0 : i32
    %c0_i32_0 = arith.constant 0 : i32
    %c0_i32_1 = arith.constant 0 : i32
    return %c0_i32, %c0_i32_0 : i32, i32
  }
  func.func @transform_3(%arg0: i32) -> (i32, i32) {
    %c0_i32 = arith.constant 0 : i32
    %c0_i32_0 = arith.constant 0 : i32
    %c0_i32_1 = arith.constant 0 : i32
    return %c0_i32, %c0_i32_0 : i32, i32
  }
  func.func @transform_4(%arg0: i32) -> (i32, i32) {
    %c0_i32 = arith.constant 0 : i32
    %c0_i32_0 = arith.constant 0 : i32
    %c0_i32_1 = arith.constant 0 : i32
    return %c0_i32, %c0_i32_0 : i32, i32
  }
  func.func @transform_5(%arg0: i32) -> (i32, i32) {
    %c0_i32 = arith.constant 0 : i32
    %c0_i32_0 = arith.constant 0 : i32
    return %arg0, %c0_i32 : i32, i32
  }
}

</mosaic_0001>

<bundles_post_ra>
// kernel: tpu_custom_call.1
= control target key start
LH: loop header
LB: loop body
LE: loop exit
PB: predicated region body
PF: predicated region fallthrough
CT: control target
= control target key end

     0   :  { %10 = vsyncpa [#allocation3], 0  ;;  %s431_s0 = inlined_call_operand.hbm [shape: f32[16,32], index: 0, kind: input, shape index: {}]   ;;  %s432_s1 = inlined_call_operand.hbm [shape: f32[32,32], index: 1, kind: input, shape index: {}]   ;;  %s433_s2 = inlined_call_operand.vmem [shape: f32[1,32], index: 2, kind: input, shape index: {}]   ;;  %s434_s3 = inlined_call_operand.vmem [shape: f32[1,32], index: 3, kind: input, shape index: {}]   ;;  %s435_s4 = inlined_call_operand.vmem [shape: f32[1,32], index: 4, kind: input, shape index: {}]   ;;  %s436_s5 = inlined_call_operand.hbm [shape: f32[16,32], index: 5, kind: output, shape index: {}]  }
   0x1   :  { %11 = vsyncpa [#allocation6], 0 }
   0x2   :  { %12 = vsyncpa [#allocation4], 0  ;;  %s334_s18 = smov [#allocation2]   ;;  %s262_s22 = scalar_lea.hbm %s431_s0, 256 }
   0x3   :  { %s18_s19 = sshll.u32 %s334_s18, 4  ;;  %p263_p0 = scmp.ne.s32.totalorder %s431_s0, %s262_s22  ;;  %s19_s19 = int_to_ptr.vmem [resolvable:$true] %s18_s19 }
   0x4   :  { %p266_p1 = scmp.lt.u32.totalorder %s262_s22, %s431_s0 }
   0x6   :  { %p268_p2 = pnand %p266_p1, %p263_p0 }
   0x8   :  { %271 = shalt.err (!%p268_p2)
}
   0x9   :  { %s272_s27 = scalar_lea.vmem %s19_s19, 256  ;;  %p277_p4 = scmp.lt.s32.totalorder %s19_s19, %s19_s19 }
   0xa   :  { %p273_p3 = scmp.ne.s32.totalorder %s19_s19, %s272_s27  ;;  %p278_p5 = scmp.lt.s32.totalorder %s272_s27, %s272_s27 }
   0xc   :  { %p279_p6 = por %p278_p5, %p277_p4 }
   0xe   :  { %p280_p7 = pnand %p279_p6, %p273_p3 }
  0x10   :  { %283 = shalt.err (!%p280_p7)
}
  0x11   :  { %s335_s28 = smov 128   ;;  %s336_s29 = smov 8  }
  0x12   :  { %24 = dma.hbm_to_vmem [thread:$0]  %s431_s0, 256, %s19_s19, [#allocation3], %s335_s28, %s335_s28, %s336_s29  }
  0x13   :  { %s337_s7 = smov [#allocation5]   ;;  %s284_s11 = scalar_lea.hbm %s432_s1, 512 }
  0x14   :  { %s30_s8 = sshll.u32 %s337_s7, 4  ;;  %p285_p8 = scmp.ne.s32.totalorder %s432_s1, %s284_s11  ;;  %s31_s8 = int_to_ptr.vmem [resolvable:$true] %s30_s8 }
  0x15   :  { %p288_p9 = scmp.lt.u32.totalorder %s284_s11, %s432_s1 }
  0x17   :  { %p290_p10 = pnand %p288_p9, %p285_p8 }
  0x19   :  { %293 = shalt.err (!%p290_p10)
}
  0x1a   :  { %s294_s16 = scalar_lea.vmem %s31_s8, 512  ;;  %p299_p12 = scmp.lt.s32.totalorder %s31_s8, %s31_s8 }
  0x1b   :  { %p295_p11 = scmp.ne.s32.totalorder %s31_s8, %s294_s16  ;;  %p300_p13 = scmp.lt.s32.totalorder %s294_s16, %s294_s16 }
  0x1d   :  { %p301_p0 = por %p300_p13, %p299_p12 }
  0x1f   :  { %p302_p1 = pnand %p301_p0, %p295_p11 }
  0x21   :  { %305 = shalt.err (!%p302_p1)
}
  0x22   :  { %36 = dma.hbm_to_vmem [thread:$0]  %s432_s1, 512, %s31_s8, [#allocation6], %s335_s28, %s335_s28, %s336_s29  }
  0x23   :  { %328 = dma.done.wait [#allocation3], 256  }
  0x24   :  { %329 = vsyncadd [#allocation3], 4294967040 }
  0x25   :  { %330 = dma.done.wait [#allocation6], 512  }
  0x26   :  { %331 = vsyncadd [#allocation6], 4294966784  ;;  %vm62_vm0 = vcmask 261120   ;;  %v51_v0 = vld [vmem:[#allocation5] sm:$0xff]  ;;  %v52_v1 = vld [vmem:[#allocation5 + $0x8] sm:$0xff]  ;;  %s338_s22 = smov [#allocation7]  }
  0x27   :  { %v53_v2 = vld [vmem:[#allocation5 + $0x10] sm:$0xff]  ;;  %v241_v3 = vpack.c.bf16 %v52_v1, %v51_v0  ;;  %v54_v4 = vld [vmem:[#allocation5 + $0x18] sm:$0xff]  ;;  %s206_s23 = sshll.u32 %s338_s22, 4  ;;  %s207_s23 = int_to_ptr.vmem [resolvable:$true] %s206_s23 }
  0x28   :  { %v49_v5 = vld [vmem:[#allocation2] sm:$0xff]  ;;  %v245_v6 = vpack.c.bf16 %v54_v4, %v53_v2  ;;  %v50_v7 = vld [vmem:[#allocation2 + $0x8] sm:$0xff]  ;;  %p311_p3 = scmp.lt.s32.totalorder %s207_s23, %s207_s23 }
  0x29   :  { %238 = vmatprep.mubr.msk.f32.mxu0 %vm62_vm0, %v49_v5  ;;  %242 = vmatprep.subr.bf16.mxu0 %v241_v3  ;;  %v219_v8 = vld [vmem:[%s433_s2] ss:$0 sm:$0xff] }
  0x2a   :  { %244 = vmatpush3.bf16.msra.mxu0 %v241_v3  ;;  %v222_v41 = vld [vmem:[%s434_s3] ss:$0 sm:$0xff]  ;;  %s306_s3 = scalar_lea.vmem %s207_s23, 256 }
  0x2b   :  { %246 = vmatprep.subr.bf16.mxu0 %v245_v6  ;;  %v223_v44 = vld [vmem:[%s435_s4] ss:$0 sm:$0xff]  ;;  %p307_p2 = scmp.ne.s32.totalorder %s207_s23, %s306_s3  ;;  %p312_p4 = scmp.lt.s32.totalorder %s306_s3, %s306_s3 }
  0x2d   :  { %p313_p5 = por %p312_p4, %p311_p3 }
  0x2e   :  { %248 = vmatpush3.bf16.msra.mxu0 %v245_v6 }
  0x2f   :  { %p314_p6 = pnand %p313_p5, %p307_p2 }
  0x31   :  { %239 = vmatmul.mubr.msk.f32.vlgmr.msra.gmra.mrb[0].mxu0 %vm62_vm0, %v50_v7 }
 0x104   :  { %v240_v9 = vpop.f32.mrb[0].mxu0 }
 0x105   :  { %v141_v10 = vadd.f32 %v240_v9, %v219_v8  ;;  %v135_v11 = vpop.f32.mrb[1].mxu0 }
 0x106   :  { %v136_v12 = vadd.f32 %v219_v8, %v135_v11 }
 0x107   :  { %v147_v13 = vmul.f32 0.70710677, %v141_v10  ;;  %v145_v20 = vmul.f32 0.5, %v141_v10 }
 0x108   :  { %v146_v14 = vmul.f32 0.70710677, %v136_v12  ;;  %v144_v17 = vmul.f32 0.5, %v136_v12 }
 0x109   :  { %254 = verf.f32 %v147_v13 }
 0x10a   :  { %256 = verf.f32 %v146_v14 }
 0x113   :  { %v255_v15 = vpop.eup %254 }
 0x114   :  { %v257_v16 = vpop.eup %256  ;;  %v151_v19 = vadd.f32 1.0, %v255_v15 }
 0x115   :  { %v150_v18 = vadd.f32 1.0, %v257_v16 }
 0x116   :  { %v153_v23 = vmul.f32 %v151_v19, %v145_v20 }
 0x117   :  { %v152_v21 = vmul.f32 %v150_v18, %v144_v17 }
 0x118   :  { %v157_v24 = vsel %vm62_vm0, %v153_v23, 0.0 }
 0x119   :  { %v154_v22 = vsel %vm62_vm0, %v152_v21, 0.0 }
 0x11a   :  { %155 = vadd.xlane.f32.xlu0 %v154_v22 }
 0x11e   :  { %158 = vadd.xlane.f32.xlu0 %v157_v24 }
 0x1a7   :  { %v156_v25 = vpop.xlane.xlu0 %155 }
 0x1a8   :  { %v161_v26 = vmul.f32 0.03125, %v156_v25 }
 0x1aa   :  { %v163_v27 = vsub.f32 %v152_v21, %v161_v26 }
 0x1ab   :  { %v159_v28 = vpop.xlane.xlu0 %158 }
 0x1ac   :  { %v162_v29 = vmul.f32 0.03125, %v159_v28  ;;  %v165_v30 = vmul.f32 %v163_v27, %v163_v27 }
 0x1ae   :  { %v164_v31 = vsub.f32 %v153_v23, %v162_v29  ;;  %v167_v32 = vsel %vm62_vm0, %v165_v30, 0.0 }
 0x1af   :  { %168 = vadd.xlane.f32.xlu1 %v167_v32 }
 0x1b0   :  { %v166_v33 = vmul.f32 %v164_v31, %v164_v31 }
 0x1b2   :  { %v170_v34 = vsel %vm62_vm0, %v166_v33, 0.0 }
 0x1b3   :  { %171 = vadd.xlane.f32.xlu1 %v170_v34 }
 0x23c   :  { %v169_v35 = vpop.xlane.xlu1 %168 }
 0x23d   :  { %v173_v36 = vmul.f32 0.03125, %v169_v35 }
 0x23f   :  { %v175_v37 = vadd.f32 1e-12, %v173_v36 }
 0x240   :  { %v172_v38 = vpop.xlane.xlu1 %171 }
 0x241   :  { %258 = vrsqrt.f32 %v175_v37  ;;  %v174_v39 = vmul.f32 0.03125, %v172_v38 }
 0x243   :  { %v176_v40 = vadd.f32 1e-12, %v174_v39 }
 0x245   :  { %260 = vrsqrt.f32 %v176_v40 }
 0x24b   :  { %v259_v42 = vpop.eup %258 }
 0x24c   :  { %v186_v43 = vmul.f32 %v259_v42, %v222_v41 }
 0x24e   :  { %v188_v45 = vmul.f32 %v186_v43, %v163_v27 }
 0x24f   :  { %v261_v46 = vpop.eup %260 }
 0x250   :  { %v187_v47 = vmul.f32 %v261_v46, %v222_v41  ;;  %v197_v48 = vadd.f32 %v223_v44, %v188_v45 }
 0x252   :  { %v189_v49 = vmul.f32 %v187_v47, %v164_v31  ;;  %199 = vst.msk [vmem:[#allocation7] sm:$0xff] %vm62_vm0, %v197_v48 }
 0x254   :  { %v198_v50 = vadd.f32 %v223_v44, %v189_v49 }
 0x256   :  { %200 = vst.msk [vmem:[#allocation7 + $0x8] sm:$0xff] %vm62_vm0, %v198_v50 }
 0x257   :  { %317 = shalt.err (!%p314_p6)
}
 0x258   :  { %s318_s25 = scalar_lea.hbm %s436_s5, 256 }
 0x259   :  { %p319_p7 = scmp.ne.s32.totalorder %s436_s5, %s318_s25  ;;  %p322_p8 = scmp.lt.u32.totalorder %s318_s25, %s436_s5 }
 0x25b   :  { %p324_p9 = pnand %p322_p8, %p319_p7 }
 0x25d   :  { %327 = shalt.err (!%p324_p9)
}
 0x25e   :  { %212 = dma.vmem_to_hbm [thread:$0]  %s207_s23, 256, %s436_s5, [#allocation4], %s335_s28, %s335_s28, %s336_s29  }
 0x25f   :  { %332 = dma.done.wait [#allocation4], 256  }
 0x260   :  { %333 = vsyncadd [#allocation4], 4294967040 }
 0x261   :  { %216 = vsyncpa [#allocation3], 1 }
 0x262   :  { %217 = vsyncpa [#allocation6], 1 }
 0x263   :  { %218 = vsyncpa [#allocation4], 1 }

</bundles_post_ra>
